<compile_context>
chip_gen: v6e
topology: v6e:2x2x1
jax: 0.10.0
libtpu: 0.0.40
codegen_flags: <defaults>
</compile_context>

<pallas_src>
import functools

import jax
import jax.numpy as jnp
from jax.experimental import pallas as pl
from jax.experimental.pallas import tpu as pltpu


def _round_up(a, b):
    return (a + b - 1) // b * b


def _cdiv(a, b):
    return -(-a // b)


def _vmem_capacity_bytes():
    """Physical VMEM per TensorCore; conservative 64 MiB (v7x) fallback."""
    try:
        return int(pltpu.get_tpu_info().vmem_capacity_bytes)
    except Exception:  # pragma: no cover - interpret mode / old jax
        return 64 * 1024 * 1024


# --------------------------------------------------------------------------
# Dense path (small / default num_classes): MXU matmul against resident centers
# --------------------------------------------------------------------------
def _proximity_dense_kernel(x_ref, centers_ref, csq_ref, labels_ref, out_ref,
                            *, bf16_matmul):
    x = x_ref[...]            # (TB, D)   f32 batch tile
    c = centers_ref[...]      # (Cpad, D) f32, zero rows beyond real C (resident)
    csq = csq_ref[...]        # (1, Cpad) f32, precomputed ||c_j||^2 (0 in pad)
    labels = labels_ref[...]  # (TB, 1)   i32, -1 marks padded rows

    tb = x.shape[0]
    cpad = c.shape[0]

    # ||x_i||^2 per row (always f32).
    xsq = jnp.sum(x * x, axis=1, keepdims=True)                     # (TB, 1)

    # x @ centers^T on the MXU. Optionally single-pass bf16 (v5e/v7x knob);
    # accumulation stays f32.
    if bf16_matmul:
        xm = x.astype(jnp.bfloat16)
        cm = c.astype(jnp.bfloat16)
    else:
        xm, cm = x, c
    xc = jax.lax.dot_general(
        xm, cm,
        dimension_numbers=(((1,), (1,)), ((), ())),
        preferred_element_type=jnp.float32,
    )                                                               # (TB, Cpad)

    # Select the label column per row WITHOUT materializing distmat:
    #   row = xsq + csq[label] - 2 * xc[:, label]
    classes = jax.lax.broadcasted_iota(jnp.int32, (tb, cpad), 1)
    mask = labels == classes                                        # (TB, Cpad)
    dot_l = jnp.sum(jnp.where(mask, xc, 0.0), axis=1, keepdims=True)    # (TB,1)
    csq_l = jnp.sum(jnp.where(mask, csq, 0.0), axis=1, keepdims=True)   # (TB,1)
    row = xsq + csq_l - 2.0 * dot_l                                 # (TB, 1)

    # Clamp only the surviving per-row distance; padded rows (label == -1)
    # contribute exactly 0.
    rowc = jnp.where(labels >= 0, jnp.clip(row, 1e-12, 1e12), 0.0)  # (TB, 1)

    # Per-tile partial sum, written as a dense (1, 8, 128) lane-aligned block.
    partial = jnp.sum(rowc)
    out_ref[...] = jnp.full(out_ref.shape, partial, dtype=jnp.float32)


# --------------------------------------------------------------------------
# Gathered-center path (large num_classes): C-independent, HBM-bound
# --------------------------------------------------------------------------
def _proximity_gather_kernel(x_ref, cl_ref, labels_ref, out_ref):
    x = x_ref[...]            # (TB, D) f32 batch tile
    cl = cl_ref[...]          # (TB, D) f32, centers[labels] gathered wrapper-side
    labels = labels_ref[...]  # (TB, 1) i32, -1 marks padded rows

    d = x - cl
    row = jnp.sum(d * d, axis=1, keepdims=True)                     # (TB, 1)
    rowc = jnp.where(labels >= 0, jnp.clip(row, 1e-12, 1e12), 0.0)

    partial = jnp.sum(rowc)
    out_ref[...] = jnp.full(out_ref.shape, partial, dtype=jnp.float32)


# --------------------------------------------------------------------------
# Wrapper
# --------------------------------------------------------------------------
def proximity_loss(x, centers, labels, *, tile_batch=1024, bf16_matmul=False,
                   dense_class_threshold=512):
    """x: (B, D), centers: (C, D), labels: (B,) int  ->  scalar f32 loss."""
    B, D = x.shape
    C = centers.shape[0]

    x = x.astype(jnp.float32)
    centers = centers.astype(jnp.float32)
    labels_i = labels.astype(jnp.int32)

    use_dense = C <= dense_class_threshold
    cpad = max(128, _round_up(C, 128)) if use_dense else 0

    # --- VMEM-aware tile sizing (generation aware: 128 MiB v5e/v6e, 64 MiB v7x)
    vmem_cap = _vmem_capacity_bytes()
    budget = int(0.70 * vmem_cap)
    if use_dense:
        # x double-buffered + resident centers(+spare buf) + labels + xc/mask temps
        per_row = 4 * (2 * D + 3 * cpad + 2 * 128)
        fixed = 4 * (2 * cpad * D + 16 * cpad + 4 * 8 * 128)
    else:
        # x + gathered centers (both double-buffered) + diff temp + labels
        per_row = 4 * (5 * D + 2 * 128)
        fixed = 4 * (4 * 8 * 128)
    tb_cap = max(8, ((budget - fixed) // per_row) // 8 * 8)

    # --- balanced batch tiling; >= 2 tiles (when possible) so both v7x TCs work
    min_tiles = 2 if B >= 16 else 1
    tile_batch = max(8, min(tile_batch, tb_cap))
    n_tiles_target = max(_cdiv(B, tile_batch), min_tiles)
    tb = min(_round_up(_cdiv(B, n_tiles_target), 8), tb_cap)
    num_tiles = _cdiv(B, tb)
    b_pad = num_tiles * tb

    # --- inputs: avoid the padded copy of x/labels in the divisible case -----
    if b_pad == B:
        x_p = x
        labels_p = labels_i.reshape(B, 1)
    else:
        x_p = jnp.zeros((b_pad, D), jnp.float32).at[:B].set(x)
        labels_p = jnp.full((b_pad, 1), -1, jnp.int32).at[:B, 0].set(labels_i)

    # --- VMEM limit: never below requirement, capped at physical minus headroom
    if use_dense:
        needed = 4 * (2 * tb * D + 2 * cpad * D + 16 * cpad + 2 * tb * 128
                      + 3 * tb * cpad + 4 * 8 * 128)
    else:
        needed = 4 * (5 * tb * D + 2 * tb * 128 + 4 * 8 * 128)
    vmem_limit = int(min(max(2 * needed, 32 << 20), vmem_cap - (2 << 20)))

    compiler_params = pltpu.CompilerParams(
        dimension_semantics=("parallel",),
        vmem_limit_bytes=vmem_limit,
    )
    out_spec = pl.BlockSpec((1, 8, 128), lambda i: (i, 0, 0))
    out_shape = jax.ShapeDtypeStruct((num_tiles, 8, 128), jnp.float32)

    if use_dense:
        # Pad classes to a lane-dense multiple of 128 (skip copy if already aligned).
        if cpad == C:
            centers_p = centers
        else:
            centers_p = jnp.zeros((cpad, D), jnp.float32).at[:C].set(centers)
        # ||c_j||^2 hoisted out of the batch loop (one tiny pass over (C, D)).
        csq = jnp.sum(centers_p * centers_p, axis=1)[None, :]        # (1, Cpad)

        kernel = functools.partial(_proximity_dense_kernel,
                                   bf16_matmul=bf16_matmul)
        out = pl.pallas_call(
            kernel,
            out_shape=out_shape,
            grid_spec=pltpu.PrefetchScalarGridSpec(
                num_scalar_prefetch=0,
                grid=(num_tiles,),
                in_specs=[
                    pl.BlockSpec((tb, D), lambda i: (i, 0)),      # x tile
                    pl.BlockSpec((cpad, D), lambda i: (0, 0)),    # centers (resident)
                    pl.BlockSpec((1, cpad), lambda i: (0, 0)),    # csq (resident)
                    pl.BlockSpec((tb, 1), lambda i: (i, 0)),      # labels tile
                ],
                out_specs=out_spec,
            ),
            compiler_params=compiler_params,
        )(x_p, centers_p, csq, labels_p)
    else:
        # Large C: gather the label's center per row and stream it alongside x.
        c_l = jnp.take(centers, labels_i, axis=0)                    # (B, D)
        if b_pad == B:
            c_l_p = c_l
        else:
            c_l_p = jnp.zeros((b_pad, D), jnp.float32).at[:B].set(c_l)

        out = pl.pallas_call(
            _proximity_gather_kernel,
            out_shape=out_shape,
            grid_spec=pltpu.PrefetchScalarGridSpec(
                num_scalar_prefetch=0,
                grid=(num_tiles,),
                in_specs=[
                    pl.BlockSpec((tb, D), lambda i: (i, 0)),      # x tile
                    pl.BlockSpec((tb, D), lambda i: (i, 0)),      # centers[labels] tile
                    pl.BlockSpec((tb, 1), lambda i: (i, 0)),      # labels tile
                ],
                out_specs=out_spec,
            ),
            compiler_params=compiler_params,
        )(x_p, c_l_p, labels_p)

    partials = out[:, 0, 0]                                          # (num_tiles,)
    # Analytic contribution of the B*(C-1) masked-out entries (each 1e-12).
    loss = (jnp.sum(partials) + jnp.float32(B * (C - 1) * 1e-12)) / jnp.float32(B)
    return loss


def proximity_loss_ref(x, centers, labels):
    """Pure-JAX reference mirroring the PyTorch forward exactly."""
    B = x.shape[0]
    C = centers.shape[0]
    distmat = (
        jnp.sum(x ** 2, axis=1, keepdims=True)
        + jnp.sum(centers ** 2, axis=1)[None, :]
        - 2.0 * x @ centers.T
    )
    mask = labels[:, None] == jnp.arange(C)[None, :]
    dist = jnp.clip(distmat * mask.astype(distmat.dtype), 1e-12, 1e12)
    return jnp.sum(dist) / B


if __name__ == "__main__":
    key = jax.random.PRNGKey(0)
    kx, kc, kl = jax.random.split(key, 3)

    # Case 1: default-style config at small shape (dense MXU path, balanced
    # tiles divide B exactly -> no wrapper-side padded copy of x).
    B, C, D = 16, 100, 128
    x = jax.random.normal(kx, (B, D), dtype=jnp.float32)
    centers = jax.random.normal(kc, (C, D), dtype=jnp.float32)
    labels = jax.random.randint(kl, (B,), 0, C, dtype=jnp.int32)
    loss = jax.block_until_ready(proximity_loss(x, centers, labels))
    loss_ref = proximity_loss_ref(x, centers, labels)
    assert jnp.allclose(loss, loss_ref, rtol=1e-5, atol=1e-5), (loss, loss_ref)

    # Case 2: ragged batch (exercises the padded-tail fallback path).
    x2 = jax.random.normal(kx, (12, D), dtype=jnp.float32)
    labels2 = jax.random.randint(kl, (12,), 0, C, dtype=jnp.int32)
    loss2 = jax.block_until_ready(proximity_loss(x2, centers, labels2))
    loss2_ref = proximity_loss_ref(x2, centers, labels2)
    assert jnp.allclose(loss2, loss2_ref, rtol=1e-5, atol=1e-5), (loss2, loss2_ref)

    # Case 3: bf16 single-pass MXU option (v5e / v7x); relaxed tolerance.
    loss3 = jax.block_until_ready(proximity_loss(x, centers, labels,
                                                 bf16_matmul=True))
    assert jnp.allclose(loss3, loss_ref, rtol=2e-2, atol=1e-3), (loss3, loss_ref)

    # Case 4: large num_classes -> gathered-center path (C-independent).
    C4, B4 = 600, 24
    centers4 = jax.random.normal(kc, (C4, D), dtype=jnp.float32)
    x4 = jax.random.normal(kx, (B4, D), dtype=jnp.float32)
    labels4 = jax.random.randint(kl, (B4,), 0, C4, dtype=jnp.int32)
    loss4 = jax.block_until_ready(proximity_loss(x4, centers4, labels4))
    loss4_ref = proximity_loss_ref(x4, centers4, labels4)
    assert jnp.allclose(loss4, loss4_ref, rtol=1e-4, atol=1e-4), (loss4, loss4_ref)

    print("KERNEL_OK")
</pallas_src>

<mosaic_0001>
module attributes {stable_mosaic.version = 11 : i64} {
  func.func @_proximity_dense_kernel(%arg0: i32, %arg1: memref<8x128xf32, #tpu.memory_space<vmem>>, %arg2: memref<128x128xf32, #tpu.memory_space<vmem>>, %arg3: memref<1x128xf32, #tpu.memory_space<vmem>>, %arg4: memref<8x1xi32, #tpu.memory_space<vmem>>, %arg5: memref<1x8x128xf32, #tpu.memory_space<vmem>>) attributes {dimension_semantics = [#tpu.dimension_semantics<parallel>], iteration_bounds = array<i64: 2>, scalar_prefetch = 0 : i64, scratch_operands = 0 : i64, tpu.core_type = #tpu.core_type<tc>, window_params = [{transform_indices = @transform_0, window_bounds = array<i64: 8, 128>}, {pipeline_mode = #tpu.pipeline_mode<synchronous>, transform_indices = @transform_1, window_bounds = array<i64: 128, 128>}, {pipeline_mode = #tpu.pipeline_mode<synchronous>, transform_indices = @transform_2, window_bounds = array<i64: 1, 128>}, {transform_indices = @transform_3, window_bounds = array<i64: 8, 1>}, {transform_indices = @transform_4, window_bounds = array<i64: 1, 8, 128>}]} {
    %c0 = arith.constant 0 : index
    %c0_0 = arith.constant 0 : index
    %0 = vector.load %arg1[%c0, %c0_0] : memref<8x128xf32, #tpu.memory_space<vmem>>, vector<8x128xf32>
    %c0_1 = arith.constant 0 : index
    %c0_2 = arith.constant 0 : index
    %1 = vector.load %arg2[%c0_1, %c0_2] : memref<128x128xf32, #tpu.memory_space<vmem>>, vector<128x128xf32>
    %c0_3 = arith.constant 0 : index
    %c0_4 = arith.constant 0 : index
    %2 = vector.load %arg3[%c0_3, %c0_4] : memref<1x128xf32, #tpu.memory_space<vmem>>, vector<1x128xf32>
    %c0_5 = arith.constant 0 : index
    %c0_6 = arith.constant 0 : index
    %3 = vector.load %arg4[%c0_5, %c0_6] : memref<8x1xi32, #tpu.memory_space<vmem>>, vector<8x1xi32>
    %4 = arith.mulf %0, %0 : vector<8x128xf32>
    %cst = arith.constant dense<0.000000e+00> : vector<8xf32>
    %5 = vector.multi_reduction <add>, %4, %cst [1] : vector<8x128xf32> to vector<8xf32>
    %6 = vector.shape_cast %5 : vector<8xf32> to vector<8x1xf32>
    %cst_7 = arith.constant dense<0.000000e+00> : vector<8x128xf32>
    %7 = tpu.matmul %0, %1, %cst_7 {dimension_numbers = #tpu.dot_dimension_numbers<[1], [1], [0], [0], [0, 0, 1, 0], [], []>} : vector<8x128xf32>, vector<128x128xf32>, vector<8x128xf32> -> vector<8x128xf32>
    %8 = tpu.iota {dimensions = array<i32: 1>} : vector<8x128xi32>
    %9 = vector.broadcast %3 : vector<8x1xi32> to vector<8x128xi32>
    %10 = arith.cmpi eq, %9, %8 : vector<8x128xi32>
    %cst_8 = arith.constant 0.000000e+00 : f32
    %11 = vector.broadcast %cst_8 : f32 to vector<8x128xf32>
    %12 = arith.select %10, %7, %11 : vector<8x128xi1>, vector<8x128xf32>
    %cst_9 = arith.constant dense<0.000000e+00> : vector<8xf32>
    %13 = vector.multi_reduction <add>, %12, %cst_9 [1] : vector<8x128xf32> to vector<8xf32>
    %14 = vector.shape_cast %13 : vector<8xf32> to vector<8x1xf32>
    %cst_10 = arith.constant 0.000000e+00 : f32
    %15 = vector.shape_cast %2 : vector<1x128xf32> to vector<1x128xf32>
    %16 = vector.broadcast %15 : vector<1x128xf32> to vector<8x128xf32>
    %17 = vector.broadcast %cst_10 : f32 to vector<8x128xf32>
    %18 = arith.select %10, %16, %17 : vector<8x128xi1>, vector<8x128xf32>
    %cst_11 = arith.constant dense<0.000000e+00> : vector<8xf32>
    %19 = vector.multi_reduction <add>, %18, %cst_11 [1] : vector<8x128xf32> to vector<8xf32>
    %20 = vector.shape_cast %19 : vector<8xf32> to vector<8x1xf32>
    %21 = arith.addf %6, %20 : vector<8x1xf32>
    %cst_12 = arith.constant 2.000000e+00 : f32
    %22 = vector.broadcast %cst_12 : f32 to vector<8x1xf32>
    %23 = arith.mulf %22, %14 : vector<8x1xf32>
    %24 = arith.subf %21, %23 : vector<8x1xf32>
    %c0_i32 = arith.constant 0 : i32
    %25 = vector.broadcast %c0_i32 : i32 to vector<8x1xi32>
    %26 = arith.cmpi sge, %3, %25 : vector<8x1xi32>
    %cst_13 = arith.constant 9.99999996E-13 : f32
    %cst_14 = arith.constant 9.99999995E+11 : f32
    %27 = vector.broadcast %cst_13 : f32 to vector<8x1xf32>
    %28 = arith.maximumf %27, %24 : vector<8x1xf32>
    %29 = vector.broadcast %cst_14 : f32 to vector<8x1xf32>
    %30 = arith.minimumf %29, %28 : vector<8x1xf32>
    %cst_15 = arith.constant 0.000000e+00 : f32
    %31 = vector.broadcast %cst_15 : f32 to vector<8x1xf32>
    %32 = arith.select %26, %30, %31 : vector<8x1xi1>, vector<8x1xf32>
    %33 = vector.shape_cast %32 : vector<8x1xf32> to vector<1x8x1xf32>
    %cst_16 = arith.constant dense<0.000000e+00> : vector<1xf32>
    %34 = vector.multi_reduction <add>, %33, %cst_16 [1, 2] : vector<1x8x1xf32> to vector<1xf32>
    %35 = vector.shape_cast %34 : vector<1xf32> to vector<1x1x1xf32>
    %36 = vector.extract %35[0, 0, 0] : f32 from vector<1x1x1xf32>
    %37 = vector.broadcast %36 : f32 to vector<1x8x128xf32>
    %c0_17 = arith.constant 0 : index
    %c0_18 = arith.constant 0 : index
    %c0_19 = arith.constant 0 : index
    %38 = vector.load %arg5[%c0_17, %c0_18, %c0_19] : memref<1x8x128xf32, #tpu.memory_space<vmem>>, vector<1x8x128xf32>
    tpu.vector_store %arg5[%c0_17, %c0_18, %c0_19], %37 {strides = array<i32>} : memref<1x8x128xf32, #tpu.memory_space<vmem>>, vector<1x8x128xf32>,
    return
  }
  func.func @transform_0(%arg0: i32) -> (i32, i32) {
    %c0_i32 = arith.constant 0 : i32
    %c0_i32_0 = arith.constant 0 : i32
    return %arg0, %c0_i32 : i32, i32
  }
  func.func @transform_1(%arg0: i32) -> (i32, i32) {
    %c0_i32 = arith.constant 0 : i32
    %c0_i32_0 = arith.constant 0 : i32
    %c0_i32_1 = arith.constant 0 : i32
    return %c0_i32, %c0_i32_0 : i32, i32
  }
  func.func @transform_2(%arg0: i32) -> (i32, i32) {
    %c0_i32 = arith.constant 0 : i32
    %c0_i32_0 = arith.constant 0 : i32
    %c0_i32_1 = arith.constant 0 : i32
    return %c0_i32, %c0_i32_0 : i32, i32
  }
  func.func @transform_3(%arg0: i32) -> (i32, i32) {
    %c0_i32 = arith.constant 0 : i32
    %c0_i32_0 = arith.constant 0 : i32
    return %arg0, %c0_i32 : i32, i32
  }
  func.func @transform_4(%arg0: i32) -> (i32, i32, i32) {
    %c0_i32 = arith.constant 0 : i32
    %c0_i32_0 = arith.constant 0 : i32
    %c0_i32_1 = arith.constant 0 : i32
    return %arg0, %c0_i32, %c0_i32_0 : i32, i32, i32
  }
}

</mosaic_0001>

<bundles_post_ra>
// kernel: tpu_custom_call.1
= control target key start
LH: loop header
LB: loop body
LE: loop exit
PB: predicated region body
PF: predicated region fallthrough
CT: control target
= control target key end

     0   :  { %9 = vsyncpa [#allocation3], 0  ;;  %s828_s0 = inlined_call_operand.vmem [shape: f32[16,128], index: 0, kind: input, shape index: {}]   ;;  %s829_s1 = inlined_call_operand.hbm [shape: f32[128,128], index: 1, kind: input, shape index: {}]   ;;  %s830_s2 = inlined_call_operand.vmem [shape: f32[1,128], index: 2, kind: input, shape index: {}]   ;;  %s831_s3 = inlined_call_operand.vmem [shape: s32[16,1], index: 3, kind: input, shape index: {}]   ;;  %s832_s4 = inlined_call_operand.hbm [shape: f32[2,8,128], index: 4, kind: output, shape index: {}]  }
   0x1   :  { %10 = vsyncpa [#allocation4], 0 }
   0x2   :  { %12 = vsyncpa [#allocation4 + $0x1], 0  ;;  %s700_s15 = smov 0   ;;  %s702_s16 = smov 0  }
   0x3   :  { %s704_s17 = smov 0   ;;  %s706_s18 = smov 0  }
   0x4 LB: > { %s721_s19 = sadd.s32 4294967295, %s666_s18   ;;  %s452_s20 = sadd.s32 4294967294, %s666_s18   ;;  %s666_s18 = sphi %s706_s18, %s840_s18   ;;  %s662_s17 = sphi %s704_s17, %s839_s17   ;;  %s658_s16 = sphi %s702_s16, %s838_s16   ;;  %s654_s15 = sphi %s700_s15, %s837_s15  }
   0x5   : > { %s725_s21 = sadd.s32 1, %s666_s18   ;;  %s119_s22 = sadd.s32 1, %s662_s17 }
   0x6   : > { %s116_s23 = ssub.s32 %s666_s18, %s725_s21  ;;  %p129_p0 = scmp.ne.s32.totalorder %s662_s17, %s658_s16 }
   0x7   : > { %p117_p1 = scmp.eq.s32.totalorder %s116_s23, 0  ;;  %p130_p2 = scmp.eq.s32.totalorder %s721_s19, 1 }
   0x8   : > { %p135_p3 = scmp.ne.s32.totalorder %s658_s16, %s654_s15  ;;  %p136_p4 = scmp.eq.s32.totalorder %s452_s20, 1 }
   0x9   : > { %s736_s24 = scalar_select %p117_p1, %s662_s17, %s119_s22  }
   0xa   : > { %p738_p5 = por %p130_p2, %p129_p0  ;;  %p742_p6 = por %p136_p4, %p135_p3 }
   0xb   : > { %p453_p7 = scmp.ge.s32.totalorder %s666_s18, 1  ;;  %p143_p8 = scmp.lt.s32.totalorder %s666_s18, 3 }
   0xc   : > { %s834_s26 = scalar_select %p742_p6, 1, 0 }
   0xd   : > { %p534_p9 = scmp.eq.s32.totalorder %s721_s19, 0  ;;  %p749_p10 = pnand %p453_p7, %p143_p8 }
   0xe   : > { %s668_s28 = smov [#allocation2]  }
   0xf   : > { %s155_s29 = sshll.u32 %s668_s28, 4  ;;  %p526_p11 = pneg %p749_p10  ;;  %s156_s29 = int_to_ptr.vmem [resolvable:$true] %s155_s29 }
  0x10   : > { %s587_s30 = scalar_lea.vmem %s156_s29, 2048  ;;  %p595_p3 = scmp.lt.s32.totalorder %s156_s29, %s156_s29 }
  0x11   : > { %p527_p12 = pnand %p534_p9, %p526_p11  ;;  %p588_p0 = scmp.ne.s32.totalorder %s156_s29, %s587_s30 }
  0x12   : > { %p596_p4 = scmp.lt.s32.totalorder %s587_s30, %s587_s30 }
  0x13   : > { %p578_p13 = pneg %p527_p12 }
  0x14   : > { %p597_p6 = por %p596_p4, %p595_p3 }
  0x15   : > { %p590_p1 = pnand %p588_p0, %p578_p13 }
  0x17   : > { %p591_p2 = pneg %p590_p1 }
  0x19   : > { %p598_p7 = pnand %p597_p6, %p591_p2 }
  0x1b   : > { %601 = shalt.err (!%p598_p7)
}
  0x1c   : > { %s669_s5 = smov 128   ;;  %s670_s6 = smov 8  }
  0x1d   : > { %529 = dma.hbm_to_vmem [thread:$0]  (!%p527_p12), %s829_s1, 2048, %s156_s29, [#allocation3], %s669_s5, %s669_s5, %s670_s6  }
  0x1e   : > { %188 = sbr.rel (%p749_p10) target bundleno = 661 (0x295), region = 36 }
  0x23   : > { %645 = dma.done.wait (%p534_p9), [#allocation3], 2048  }
  0x24   : > { %647 = vsyncadd (%p534_p9), [#allocation3], 4294965248  ;;  %p217_p8 = scmp.lt.s32.totalorder %s721_s19, 1  ;;  %v671_v0 = vmov 0.0   ;;  %vm672_vm0 = vmmov 0   ;;  %v673_v1 = vmov 0   ;;  %v317_v21 = vlaneseq }
  0x25   : > { %483 = vmatprep.subr.mxu0 %v671_v0  ;;  %515 = vmatprep.mubr.msk.f32.mxu0 %vm672_vm0, %v671_v0  ;;  %v241_v2 = vld [vmem:[#allocation2 + $0x78] sm:$0xff]  ;;  %v240_v3 = vld [vmem:[#allocation2 + $0x70] sm:$0xff]  ;;  %v239_v5 = vld [vmem:[#allocation2 + $0x68] sm:$0xff]  ;;  %vm342_vm3 = vcmask 7168   ;;  %s214_s28 = sand.u32 1, %s658_s16   ;;  %s463_s6 = sshll.u32 %s721_s19, 7 }
  0x26   : > { %575 = vset.pattern.permute.xlu0 %v673_v1  ;;  %s768_s9 = scalar_select %p217_p8, %s721_s19, 1  ;;  %484 = vmatpush3.xpose.msra.mxu0 %v241_v2  ;;  %v238_v6 = vld [vmem:[#allocation2 + $0x60] sm:$0xff]  ;;  %v237_v7 = vld [vmem:[#allocation2 + $0x58] sm:$0xff]  ;;  %v236_v8 = vld [vmem:[#allocation2 + $0x50] sm:$0xff]  ;;  %v318_v22 = vand.u32 127, %v317_v21 }
  0x27   : > { %485 = vmatprep.subr.mxu0 %v671_v0  ;;  %v235_v9 = vld [vmem:[#allocation2 + $0x48] sm:$0xff]  ;;  %v234_v10 = vld [vmem:[#allocation2 + $0x40] sm:$0xff]  ;;  %v233_v11 = vld [vmem:[#allocation2 + $0x38] sm:$0xff]  ;;  %s458_s29 = sshll.u32 %s214_s28, 3  ;;  %s356_s11 = scalar_lea.sflag [#allocation4], %s214_s28 }
  0x28   : > { %s459_s10 = sshll.u32 %s768_s9, 3  ;;  %v232_v12 = vld [vmem:[#allocation2 + $0x30] sm:$0xff]  ;;  %v231_v13 = vld [vmem:[#allocation2 + $0x28] sm:$0xff]  ;;  %v230_v14 = vld [vmem:[#allocation2 + $0x20] sm:$0xff]  ;;  %s216_s30 = scalar_lea.vmem [#allocation5], %s458_s29 }
  0x29   : > { %s224_s13 = scalar_lea.vmem %s831_s3, %s459_s10  ;;  %v229_v15 = vld [vmem:[#allocation2 + $0x18] sm:$0xff]  ;;  %v228_v16 = vld [vmem:[#allocation2 + $0x10] sm:$0xff]  ;;  %v227_v17 = vld [vmem:[#allocation2 + $0x8] sm:$0xff]  ;;  %s220_s22 = scalar_lea.vmem %s828_s0, %s459_s10 }
  0x2a   : > { %486 = vmatpush3.xpose.msra.mxu0 %v240_v3  ;;  %v776_v4 = vld [vmem:[%s224_s13] sm:$0xff]  ;;  %s369_s5 = sshll.u32 %s216_s30, 4  ;;  %s367_s10 = scalar_lea.hbm %s832_s4, %s463_s6  ;;  %s790_s5 = int_to_ptr.vmem [resolvable:$true] %s369_s5 }
  0x2b   : > { %487 = vmatprep.subr.mxu0 %v671_v0  ;;  %320 = vperm.xlu0 %575, %v776_v4   ;;  %v226_v18 = vld [vmem:[#allocation2] sm:$0xff]  ;;  %vm338_vm2 = vcmp.ge.s32.totalorder %v776_v4, 0  ;;  %s602_s12 = scalar_lea.vmem %s790_s5, 128  ;;  %s674_s13 = smov [#allocation5]  }
  0x2c   : > { %v225_v19 = vld [vmem:[%s220_s22] sm:$0xff]  ;;  %p603_p6 = scmp.ne.s32.totalorder %s790_s5, %s602_s12  ;;  %s606_s19 = sshll.u32 %s674_s13, 4  ;;  %s607_s19 = int_to_ptr.vmem [resolvable:$false] %s606_s19 }
  0x2d   : > { %v244_v20 = vmul.f32 %v225_v19, %v225_v19  ;;  %v461_v27 = vld [vmem:[%s830_s2] ss:$0 sm:$0xff]  ;;  %s608_s14 = scalar_lea.vmem %s607_s19, 256  ;;  %p609_p11 = scmp.lt.s32.totalorder %s790_s5, %s607_s19 }
  0x2e   : > { %488 = vmatpush3.xpose.msra.mxu0 %v239_v5  ;;  %p604_p9 = pnand %p603_p6, %p738_p5  ;;  %p610_p12 = scmp.lt.s32.totalorder %s608_s14, %s602_s12 }
  0x2f   : > { %489 = vmatprep.subr.mxu0 %v671_v0 }
  0x30   : > { %p605_p10 = pneg %p604_p9  ;;  %p611_p13 = por %p610_p12, %p609_p11 }
  0x32   : > { %490 = vmatpush3.xpose.msra.mxu0 %v238_v6  ;;  %p612_p0 = pnand %p611_p13, %p605_p10 }
  0x33   : > { %491 = vmatprep.subr.mxu0 %v671_v0 }
  0x36   : > { %492 = vmatpush3.xpose.msra.mxu0 %v237_v7 }
  0x37   : > { %493 = vmatprep.subr.mxu0 %v671_v0 }
  0x3a   : > { %494 = vmatpush3.xpose.msra.mxu0 %v236_v8 }
  0x3b   : > { %495 = vmatprep.subr.mxu0 %v671_v0 }
  0x3e   : > { %496 = vmatpush3.xpose.msra.mxu0 %v235_v9 }
  0x3f   : > { %497 = vmatprep.subr.mxu0 %v671_v0 }
  0x42   : > { %498 = vmatpush3.xpose.msra.mxu0 %v234_v10 }
  0x43   : > { %499 = vmatprep.subr.mxu0 %v671_v0 }
  0x46   : > { %500 = vmatpush3.xpose.msra.mxu0 %v233_v11 }
  0x47   : > { %501 = vmatprep.subr.mxu0 %v671_v0 }
  0x4a   : > { %502 = vmatpush3.xpose.msra.mxu0 %v232_v12  ;;  %245 = vadd.xlane.f32.xlu0 %v244_v20 }
  0x4b   : > { %503 = vmatprep.subr.mxu0 %v671_v0 }
  0x4e   : > { %504 = vmatpush3.xpose.msra.mxu0 %v231_v13 }
  0x4f   : > { %505 = vmatprep.subr.mxu0 %v671_v0 }
  0x52   : > { %506 = vmatpush3.xpose.msra.mxu0 %v230_v14 }
  0x53   : > { %507 = vmatprep.subr.mxu0 %v671_v0 }
  0x56   : > { %508 = vmatpush3.xpose.msra.mxu0 %v229_v15 }
  0x57   : > { %509 = vmatprep.subr.mxu0 %v671_v0 }
  0x5a   : > { %510 = vmatpush3.xpose.msra.mxu0 %v228_v16 }
  0x5b   : > { %511 = vmatprep.subr.mxu0 %v671_v0 }
  0x5e   : > { %512 = vmatpush3.xpose.msra.mxu0 %v227_v17 }
  0x5f   : > { %513 = vmatprep.subr.mxu0 %v671_v0 }
  0x62   : > { %514 = vmatpush3.xpose.msra.mxu0 %v226_v18 }
  0x65   : > { %516 = vmatmul.mubr.f32.vlgmr.msra.gmra.mxu0 %v225_v19 }
  0xa6   : > { %v321_v23 = vpop.permute.xlu0 %320 }
  0xa7   : > { %vm322_vm1 = vcmp.eq.s32.totalorder %v321_v23, %v318_v22 }
  0xa8   : > { %v332_v28 = vsel %vm322_vm1, %v461_v27, 0.0 }
  0xd3   : > { %v246_v30 = vpop.xlane.xlu0 %245 }
 0x125   : > { %v313_v24 = vpop.f32.mrf.mxu0 }
 0x126   : > { %v323_v25 = vsel %vm322_vm1, %v313_v24, 0.0 }
 0x127   : > { %324 = vadd.xlane.f32.xlu1 %v323_v25  ;;  %v517_v26 = vpop.f32.mrf.mxu0 }
 0x12b   : > { %333 = vadd.xlane.f32.xlu1 %v332_v28 }
 0x1b0   : > { %v325_v29 = vpop.xlane.xlu1 %324 }
 0x1b1   : > { %v336_v32 = vmul.f32 2.0, %v325_v29 }
 0x1b4   : > { %v334_v31 = vpop.xlane.xlu1 %333 }
 0x1b5   : > { %v335_v33 = vadd.f32 %v334_v31, %v246_v30 }
 0x1b7   : > { %v337_v34 = vsub.f32 %v335_v33, %v336_v32 }
 0x1b9   : > { %v339_v35 = vmax.f32 %v337_v34, 1e-12 }
 0x1bb   : > { %v340_v36 = vmin.f32 %v339_v35, 1e+12 }
 0x1bd   : > { %v341_v37 = vsel %vm338_vm2, %v340_v36, 0.0 }
 0x1be   : > { %v343_v38 = vsel %vm342_vm3, %v341_v37, 0.0 }
 0x1bf   : > { %344 = vadd.xlane.f32.xlu1 %v343_v38 }
 0x248   : > { %v345_v39 = vpop.xlane.xlu1 %344 }
 0x249   : > { %v346_v40 = vrot.slane %v345_v39, 4 }
 0x24b   : > { %v347_v41 = vadd.f32 %v346_v40, %v345_v39 }
 0x24d   : > { %v348_v42 = vrot.slane %v347_v41, 2 }
 0x24f   : > { %v349_v43 = vadd.f32 %v348_v42, %v347_v41 }
 0x251   : > { %v350_v44 = vrot.slane %v349_v43, 1 }
 0x253   : > { %v351_v45 = vadd.f32 %v350_v44, %v349_v43 }
 0x255   : > { %518 = vpush %v351_v45 }
 0x286   : > { %s519_s7 = spop %518 }
 0x287   : > { %v353_v46 = vstv %s519_s7 }
 0x288   : > { %354 = vst [vmem:[%s216_s30] sm:$0xff] %v353_v46 }
 0x289   : > { %615 = shalt.err (!%p612_p0)
}
 0x28a   : > { %s616_s20 = scalar_lea.hbm %s367_s10, 128  ;;  %s620_s27 = scalar_lea.hbm %s832_s4, 256 }
 0x28b   : > { %p617_p1 = scmp.ne.s32.totalorder %s367_s10, %s616_s20  ;;  %p621_p4 = scmp.lt.s32.totalorder %s367_s10, %s832_s4 }
 0x28c   : > { %p622_p7 = scmp.lt.s32.totalorder %s620_s27, %s616_s20 }
 0x28d   : > { %p618_p2 = pnand %p617_p1, %p738_p5 }
 0x28e   : > { %p623_p8 = por %p622_p7, %p621_p4 }
 0x28f   : > { %p619_p3 = pneg %p618_p2 }
 0x291   : > { %p624_p6 = pnand %p623_p8, %p619_p3 }
 0x293   : > { %627 = shalt.err (!%p624_p6)
}
 0x294   : > { %524 = dma.vmem_to_hbm [thread:$0]  (%p738_p5), %s790_s5, 128, %s367_s10, %s356_s11  }
 0x295 PF: > { %p536_p9 = scmp.ge.s32.totalorder %s666_s18, 2  ;;  %s381_s30 = sand.u32 1, %s654_s15  }
 0x296   : > { %p836_p10 = scmp.ne.s32.totalorder %s834_s26, 0  ;;  %s382_s6 = scalar_lea.sflag [#allocation4], %s381_s30 }
 0x298   : > { %p531_p11 = pnand %p536_p9, %p836_p10 }
 0x29a   : > { %p532_p12 = pneg %p531_p11 }
 0x29c   : > { %649 = dma.done.wait (%p532_p12), %s382_s6, 128  }
 0x29d   : > { %651 = vsyncadd (%p532_p12), %s382_s6, 4294967168  ;;  %p15_p13 = scmp.ge.s32.totalorder %s725_s21, 4   ;;  %s837_s15 = smov %s658_s16 }
 0x29e   : > { %s838_s16 = smov %s662_s17  ;;  %s839_s17 = smov %s736_s24 }
 0x29f   : > { %s840_s18 = smov %s725_s21  ;;  %17 = sbr.rel (!%p15_p13) target bundleno = 4 (0x4), region = 79 }
 0x2a4   :  { %387 = vsyncpa [#allocation3], 1 }
 0x2a5   :  { %389 = vsyncpa [#allocation3 + $0x1], 1 }
 0x2a6   :  { %390 = vsyncpa [#allocation4], 1 }
 0x2a7   :  { %392 = vsyncpa [#allocation4 + $0x1], 1 }

</bundles_post_ra>
